<compile_context>
chip_gen: v5e
topology: v5e:2x2
jax: 0.10.0
libtpu: 0.0.40
codegen_flags: <defaults>
</compile_context>

<pallas_src>
import jax
import jax.numpy as jnp
from jax.experimental import pallas as pl
from jax.experimental.pallas import tpu as pltpu


def _residual_conv_block_kernel(x_ref, w1_ref, b1_ref, w2_ref, b2_ref, bs_ref,
                                o_ref, xpad_ref, hpad_ref):
    # x_ref:    (B_TILE, L, Cin)           bf16 (compute dtype)
    # w1_ref:   (Cin, 4*Cout)              conv1 taps k=0,1,2 + 1x1 shortcut
    # w2_ref:   (Cout, 3*Cout)             conv2 taps k=0,1,2
    # b*_ref:   (1, Cout)                  f32 biases
    # o_ref:    (B_TILE, L, Cout)          f32 output
    # xpad_ref: (B_TILE*(L+2), Cin) VMEM   zero-padded staging for conv1 input
    # hpad_ref: (B_TILE*(L+2), Cout) VMEM  zero-padded staging for conv2 input
    B, L, cin = x_ref.shape
    cout = o_ref.shape[2]
    Lp = L + 2                       # per-batch segment length incl. halo rows

    # Stage the input into the zero-padded scratch (padding=1 handled by the
    # zero halo rows); flattened to 2D so the whole tile feeds one matmul.
    xpad_ref[...] = jnp.zeros_like(xpad_ref)
    for b in range(B):
        xpad_ref[b * Lp + 1:b * Lp + 1 + L, :] = x_ref[b].astype(xpad_ref.dtype)

    # Fused matmul #1: conv1 taps and the 1x1 shortcut share the same LHS rows,
    # so their weights are concatenated along the output axis.
    y = jnp.dot(xpad_ref[...], w1_ref[...],
                preferred_element_type=jnp.float32)     # (B*(L+2), 4*Cout) f32

    # conv1 + bias + ReLU -> second zero-padded scratch (conv2's input).
    hpad_ref[...] = jnp.zeros_like(hpad_ref)
    for b in range(B):
        r = b * Lp
        acc1 = (y[r:r + L, 0:cout] +
                y[r + 1:r + 1 + L, cout:2 * cout] +
                y[r + 2:r + 2 + L, 2 * cout:3 * cout])
        h1 = jnp.maximum(acc1 + b1_ref[...], 0.0)       # f32 elementwise
        hpad_ref[r + 1:r + 1 + L, :] = h1.astype(hpad_ref.dtype)

    # Fused matmul #2: conv2 taps k=0,1,2.
    z = jnp.dot(hpad_ref[...], w2_ref[...],
                preferred_element_type=jnp.float32)     # (B*(L+2), 3*Cout) f32

    for b in range(B):
        r = b * Lp
        acc2 = (z[r:r + L, 0:cout] +
                z[r + 1:r + 1 + L, cout:2 * cout] +
                z[r + 2:r + 2 + L, 2 * cout:3 * cout])
        sc = y[r + 1:r + 1 + L, 3 * cout:4 * cout]      # 1x1 shortcut tap
        out = jnp.maximum(acc2 + b2_ref[...] + sc + bs_ref[...], 0.0)
        o_ref[b] = out.astype(o_ref.dtype)


def _pick_batch_tile(n, max_tile=8):
    for t in range(min(n, max_tile), 0, -1):
        if n % t == 0:
            return t
    return 1


def residual_conv_block(x_ncl, params, *, compute_dtype=jnp.bfloat16):
    """x_ncl: (N, C_in, L) float32, PyTorch Conv1d layout. Returns (N, C_out, L)."""
    w1, b1, w2, b2, ws, bs = params
    N, cin, L = x_ncl.shape
    cout = w1.shape[0]

    # TODO(synk): accept/produce channels-last (N, L, C) end-to-end to drop these
    # boundary transposes; kept here only to preserve the PyTorch NCL interface.
    x_nlc = jnp.transpose(x_ncl, (0, 2, 1)).astype(compute_dtype)    # (N, L, Cin)

    # Identity shortcut (in_channels == out_channels) == matmul with I, bias 0.
    if ws is None:
        ws_t = jnp.eye(cin, cout, dtype=jnp.float32)
        bs = jnp.zeros((cout,), jnp.float32)
    else:
        ws_t = jnp.transpose(ws[:, :, 0])                            # (Cin, Cout)

    # Fused weights: conv1 taps + shortcut -> (Cin, 4*Cout); conv2 taps -> (Cout, 3*Cout).
    w1_big = jnp.concatenate(
        [jnp.transpose(w1[:, :, k]) for k in range(3)] + [ws_t],
        axis=1).astype(compute_dtype)
    w2_big = jnp.concatenate(
        [jnp.transpose(w2[:, :, k]) for k in range(3)],
        axis=1).astype(compute_dtype)

    b1_r = b1[None, :].astype(jnp.float32)
    b2_r = b2[None, :].astype(jnp.float32)
    bs_r = bs[None, :].astype(jnp.float32)

    b_tile = _pick_batch_tile(N)
    grid = (N // b_tile,)

    out_nlc = pl.pallas_call(
        _residual_conv_block_kernel,
        out_shape=jax.ShapeDtypeStruct((N, L, cout), jnp.float32),
        grid=grid,
        in_specs=[
            pl.BlockSpec((b_tile, L, cin), lambda n: (n, 0, 0)),
            pl.BlockSpec((cin, 4 * cout), lambda n: (0, 0)),
            pl.BlockSpec((1, cout), lambda n: (0, 0)),
            pl.BlockSpec((cout, 3 * cout), lambda n: (0, 0)),
            pl.BlockSpec((1, cout), lambda n: (0, 0)),
            pl.BlockSpec((1, cout), lambda n: (0, 0)),
        ],
        out_specs=pl.BlockSpec((b_tile, L, cout), lambda n: (n, 0, 0)),
        scratch_shapes=[
            pltpu.VMEM((b_tile * (L + 2), cin), compute_dtype),
            pltpu.VMEM((b_tile * (L + 2), cout), compute_dtype),
        ],
        compiler_params=pltpu.CompilerParams(
            dimension_semantics=("parallel",),
            vmem_limit_bytes=64 * 1024 * 1024,
        ),
    )(x_nlc, w1_big, b1_r, w2_big, b2_r, bs_r)

    return jnp.transpose(out_nlc, (0, 2, 1))                         # (N, Cout, L)


def ref_forward(x, params):
    """Independent f32 reference using lax convolutions (PyTorch semantics)."""
    w1, b1, w2, b2, ws, bs = params

    def conv1d(x, w, b, pad):
        y = jax.lax.conv_general_dilated(
            x, w, window_strides=(1,), padding=[(pad, pad)],
            dimension_numbers=("NCH", "OIH", "NCH"))
        return y + b[None, :, None]

    h = jax.nn.relu(conv1d(x, w1, b1, 1))
    h = conv1d(h, w2, b2, 1)
    sc = conv1d(x, ws, bs, 0) if ws is not None else x
    return jax.nn.relu(h + sc)


def init_params(key, cin, cout):
    ks = jax.random.split(key, 6)
    w1 = jax.random.normal(ks[0], (cout, cin, 3), jnp.float32) * 0.1
    b1 = jax.random.normal(ks[1], (cout,), jnp.float32) * 0.1
    w2 = jax.random.normal(ks[2], (cout, cout, 3), jnp.float32) * 0.1
    b2 = jax.random.normal(ks[3], (cout,), jnp.float32) * 0.1
    # shortcut 1x1 conv (in_channels != out_channels branch)
    ws = jax.random.normal(ks[4], (cout, cin, 1), jnp.float32) * 0.1
    bs = jax.random.normal(ks[5], (cout,), jnp.float32) * 0.1
    return (w1, b1, w2, b2, ws, bs)


if __name__ == "__main__":
    N, Cin, Cout, L = 2, 4, 8, 16
    key = jax.random.PRNGKey(0)
    kx, kp = jax.random.split(key)
    x = jax.random.normal(kx, (N, Cin, L), jnp.float32)
    params = init_params(kp, Cin, Cout)

    out = residual_conv_block(x, params)          # bf16 MXU operands, f32 accum
    out = jax.block_until_ready(out)

    ref = jax.block_until_ready(ref_forward(x, params))
    assert out.shape == (N, Cout, L)
    # bf16 operands -> loosened tolerance (accumulation kept in f32).
    assert jnp.allclose(out, ref, atol=3e-2, rtol=3e-2), (
        f"max err {jnp.max(jnp.abs(out - ref))}")
    print("KERNEL_OK")
</pallas_src>

<mosaic_0001>
module attributes {stable_mosaic.version = 11 : i64} {
  func.func @_residual_conv_block_kernel(%arg0: i32, %arg1: memref<2x16x4xbf16, #tpu.memory_space<vmem>>, %arg2: memref<4x32xbf16, #tpu.memory_space<vmem>>, %arg3: memref<1x8xf32, #tpu.memory_space<vmem>>, %arg4: memref<8x24xbf16, #tpu.memory_space<vmem>>, %arg5: memref<1x8xf32, #tpu.memory_space<vmem>>, %arg6: memref<1x8xf32, #tpu.memory_space<vmem>>, %arg7: memref<2x16x8xf32, #tpu.memory_space<vmem>>, %arg8: memref<36x4xbf16, #tpu.memory_space<vmem>>, %arg9: memref<36x8xbf16, #tpu.memory_space<vmem>>) attributes {dimension_semantics = [#tpu.dimension_semantics<parallel>], iteration_bounds = array<i64: 1>, scalar_prefetch = 0 : i64, scratch_operands = 2 : i64, tpu.core_type = #tpu.core_type<tc>, window_params = [{transform_indices = @transform_0, window_bounds = array<i64: 2, 16, 4>}, {pipeline_mode = #tpu.pipeline_mode<synchronous>, transform_indices = @transform_1, window_bounds = array<i64: 4, 32>}, {pipeline_mode = #tpu.pipeline_mode<synchronous>, transform_indices = @transform_2, window_bounds = array<i64: 1, 8>}, {pipeline_mode = #tpu.pipeline_mode<synchronous>, transform_indices = @transform_3, window_bounds = array<i64: 8, 24>}, {pipeline_mode = #tpu.pipeline_mode<synchronous>, transform_indices = @transform_4, window_bounds = array<i64: 1, 8>}, {pipeline_mode = #tpu.pipeline_mode<synchronous>, transform_indices = @transform_5, window_bounds = array<i64: 1, 8>}, {transform_indices = @transform_6, window_bounds = array<i64: 2, 16, 8>}]} {
    %cst = arith.constant 0.000000e+00 : bf16
    %0 = vector.broadcast %cst : bf16 to vector<36x4xbf16>
    %c0 = arith.constant 0 : index
    %c0_0 = arith.constant 0 : index
    %1 = vector.load %arg8[%c0, %c0_0] : memref<36x4xbf16, #tpu.memory_space<vmem>>, vector<36x4xbf16>
    tpu.vector_store %arg8[%c0, %c0_0], %0 {strides = array<i32>} : memref<36x4xbf16, #tpu.memory_space<vmem>>, vector<36x4xbf16>,
    %c0_1 = arith.constant 0 : index
    %c0_2 = arith.constant 0 : index
    %c0_3 = arith.constant 0 : index
    %2 = vector.load %arg1[%c0_1, %c0_2, %c0_3] : memref<2x16x4xbf16, #tpu.memory_space<vmem>>, vector<1x16x4xbf16>
    %3 = vector.shape_cast %2 : vector<1x16x4xbf16> to vector<16x4xbf16>
    %c1 = arith.constant 1 : index
    %c0_4 = arith.constant 0 : index
    %4 = vector.load %arg8[%c1, %c0_4] : memref<36x4xbf16, #tpu.memory_space<vmem>>, vector<16x4xbf16>
    tpu.vector_store %arg8[%c1, %c0_4], %3 {strides = array<i32>} : memref<36x4xbf16, #tpu.memory_space<vmem>>, vector<16x4xbf16>,
    %c1_5 = arith.constant 1 : index
    %c0_6 = arith.constant 0 : index
    %c0_7 = arith.constant 0 : index
    %5 = vector.load %arg1[%c1_5, %c0_6, %c0_7] : memref<2x16x4xbf16, #tpu.memory_space<vmem>>, vector<1x16x4xbf16>
    %6 = vector.shape_cast %5 : vector<1x16x4xbf16> to vector<16x4xbf16>
    %c19 = arith.constant 19 : index
    %c0_8 = arith.constant 0 : index
    %7 = vector.load %arg8[%c19, %c0_8] : memref<36x4xbf16, #tpu.memory_space<vmem>>, vector<16x4xbf16>
    tpu.vector_store %arg8[%c19, %c0_8], %6 {strides = array<i32>} : memref<36x4xbf16, #tpu.memory_space<vmem>>, vector<16x4xbf16>,
    %c0_9 = arith.constant 0 : index
    %c0_10 = arith.constant 0 : index
    %8 = vector.load %arg8[%c0_9, %c0_10] : memref<36x4xbf16, #tpu.memory_space<vmem>>, vector<36x4xbf16>
    %c0_11 = arith.constant 0 : index
    %c0_12 = arith.constant 0 : index
    %9 = vector.load %arg2[%c0_11, %c0_12] : memref<4x32xbf16, #tpu.memory_space<vmem>>, vector<4x32xbf16>
    %cst_13 = arith.constant dense<0.000000e+00> : vector<36x32xf32>
    %10 = tpu.matmul %8, %9, %cst_13 {dimension_numbers = #tpu.dot_dimension_numbers<[1], [0], [0], [1], [0, 0, 1, 1], [], []>} : vector<36x4xbf16>, vector<4x32xbf16>, vector<36x32xf32> -> vector<36x32xf32>
    %cst_14 = arith.constant 0.000000e+00 : bf16
    %11 = vector.broadcast %cst_14 : bf16 to vector<36x8xbf16>
    %c0_15 = arith.constant 0 : index
    %c0_16 = arith.constant 0 : index
    %12 = vector.load %arg9[%c0_15, %c0_16] : memref<36x8xbf16, #tpu.memory_space<vmem>>, vector<36x8xbf16>
    tpu.vector_store %arg9[%c0_15, %c0_16], %11 {strides = array<i32>} : memref<36x8xbf16, #tpu.memory_space<vmem>>, vector<36x8xbf16>,
    %13 = vector.extract_strided_slice %10 {offsets = [0, 0], sizes = [16, 8], strides = [1, 1]} : vector<36x32xf32> to vector<16x8xf32>
    %14 = vector.extract_strided_slice %10 {offsets = [1, 8], sizes = [16, 8], strides = [1, 1]} : vector<36x32xf32> to vector<16x8xf32>
    %15 = arith.addf %13, %14 : vector<16x8xf32>
    %16 = vector.extract_strided_slice %10 {offsets = [2, 16], sizes = [16, 8], strides = [1, 1]} : vector<36x32xf32> to vector<16x8xf32>
    %17 = arith.addf %15, %16 : vector<16x8xf32>
    %c0_17 = arith.constant 0 : index
    %c0_18 = arith.constant 0 : index
    %18 = vector.load %arg3[%c0_17, %c0_18] : memref<1x8xf32, #tpu.memory_space<vmem>>, vector<1x8xf32>
    %19 = vector.broadcast %18 : vector<1x8xf32> to vector<16x8xf32>
    %20 = arith.addf %17, %19 : vector<16x8xf32>
    %cst_19 = arith.constant 0.000000e+00 : f32
    %21 = vector.broadcast %cst_19 : f32 to vector<16x8xf32>
    %22 = arith.maximumf %20, %21 : vector<16x8xf32>
    %23 = arith.truncf %22 : vector<16x8xf32> to vector<16x8xbf16>
    %c1_20 = arith.constant 1 : index
    %c0_21 = arith.constant 0 : index
    %24 = vector.load %arg9[%c1_20, %c0_21] : memref<36x8xbf16, #tpu.memory_space<vmem>>, vector<16x8xbf16>
    tpu.vector_store %arg9[%c1_20, %c0_21], %23 {strides = array<i32>} : memref<36x8xbf16, #tpu.memory_space<vmem>>, vector<16x8xbf16>,
    %25 = vector.extract_strided_slice %10 {offsets = [18, 0], sizes = [16, 8], strides = [1, 1]} : vector<36x32xf32> to vector<16x8xf32>
    %26 = vector.extract_strided_slice %10 {offsets = [19, 8], sizes = [16, 8], strides = [1, 1]} : vector<36x32xf32> to vector<16x8xf32>
    %27 = arith.addf %25, %26 : vector<16x8xf32>
    %28 = vector.extract_strided_slice %10 {offsets = [20, 16], sizes = [16, 8], strides = [1, 1]} : vector<36x32xf32> to vector<16x8xf32>
    %29 = arith.addf %27, %28 : vector<16x8xf32>
    %c0_22 = arith.constant 0 : index
    %c0_23 = arith.constant 0 : index
    %30 = vector.load %arg3[%c0_22, %c0_23] : memref<1x8xf32, #tpu.memory_space<vmem>>, vector<1x8xf32>
    %31 = vector.broadcast %30 : vector<1x8xf32> to vector<16x8xf32>
    %32 = arith.addf %29, %31 : vector<16x8xf32>
    %cst_24 = arith.constant 0.000000e+00 : f32
    %33 = vector.broadcast %cst_24 : f32 to vector<16x8xf32>
    %34 = arith.maximumf %32, %33 : vector<16x8xf32>
    %35 = arith.truncf %34 : vector<16x8xf32> to vector<16x8xbf16>
    %c19_25 = arith.constant 19 : index
    %c0_26 = arith.constant 0 : index
    %36 = vector.load %arg9[%c19_25, %c0_26] : memref<36x8xbf16, #tpu.memory_space<vmem>>, vector<16x8xbf16>
    tpu.vector_store %arg9[%c19_25, %c0_26], %35 {strides = array<i32>} : memref<36x8xbf16, #tpu.memory_space<vmem>>, vector<16x8xbf16>,
    %c0_27 = arith.constant 0 : index
    %c0_28 = arith.constant 0 : index
    %37 = vector.load %arg9[%c0_27, %c0_28] : memref<36x8xbf16, #tpu.memory_space<vmem>>, vector<36x8xbf16>
    %c0_29 = arith.constant 0 : index
    %c0_30 = arith.constant 0 : index
    %38 = vector.load %arg4[%c0_29, %c0_30] : memref<8x24xbf16, #tpu.memory_space<vmem>>, vector<8x24xbf16>
    %cst_31 = arith.constant dense<0.000000e+00> : vector<36x24xf32>
    %39 = tpu.matmul %37, %38, %cst_31 {dimension_numbers = #tpu.dot_dimension_numbers<[1], [0], [0], [1], [0, 0, 1, 1], [], []>} : vector<36x8xbf16>, vector<8x24xbf16>, vector<36x24xf32> -> vector<36x24xf32>
    %40 = vector.extract_strided_slice %39 {offsets = [0, 0], sizes = [16, 8], strides = [1, 1]} : vector<36x24xf32> to vector<16x8xf32>
    %41 = vector.extract_strided_slice %39 {offsets = [1, 8], sizes = [16, 8], strides = [1, 1]} : vector<36x24xf32> to vector<16x8xf32>
    %42 = arith.addf %40, %41 : vector<16x8xf32>
    %43 = vector.extract_strided_slice %39 {offsets = [2, 16], sizes = [16, 8], strides = [1, 1]} : vector<36x24xf32> to vector<16x8xf32>
    %44 = arith.addf %42, %43 : vector<16x8xf32>
    %45 = vector.extract_strided_slice %10 {offsets = [1, 24], sizes = [16, 8], strides = [1, 1]} : vector<36x32xf32> to vector<16x8xf32>
    %c0_32 = arith.constant 0 : index
    %c0_33 = arith.constant 0 : index
    %46 = vector.load %arg5[%c0_32, %c0_33] : memref<1x8xf32, #tpu.memory_space<vmem>>, vector<1x8xf32>
    %47 = vector.broadcast %46 : vector<1x8xf32> to vector<16x8xf32>
    %48 = arith.addf %44, %47 : vector<16x8xf32>
    %49 = arith.addf %48, %45 : vector<16x8xf32>
    %c0_34 = arith.constant 0 : index
    %c0_35 = arith.constant 0 : index
    %50 = vector.load %arg6[%c0_34, %c0_35] : memref<1x8xf32, #tpu.memory_space<vmem>>, vector<1x8xf32>
    %51 = vector.broadcast %50 : vector<1x8xf32> to vector<16x8xf32>
    %52 = arith.addf %49, %51 : vector<16x8xf32>
    %cst_36 = arith.constant 0.000000e+00 : f32
    %53 = vector.broadcast %cst_36 : f32 to vector<16x8xf32>
    %54 = arith.maximumf %52, %53 : vector<16x8xf32>
    %c0_37 = arith.constant 0 : index
    %c0_38 = arith.constant 0 : index
    %c0_39 = arith.constant 0 : index
    %55 = vector.load %arg7[%c0_37, %c0_38, %c0_39] : memref<2x16x8xf32, #tpu.memory_space<vmem>>, vector<1x16x8xf32>
    %56 = vector.shape_cast %55 : vector<1x16x8xf32> to vector<16x8xf32>
    %57 = vector.shape_cast %54 : vector<16x8xf32> to vector<1x16x8xf32>
    tpu.vector_store %arg7[%c0_37, %c0_38, %c0_39], %57 {strides = array<i32>} : memref<2x16x8xf32, #tpu.memory_space<vmem>>, vector<1x16x8xf32>,
    %58 = vector.extract_strided_slice %39 {offsets = [18, 0], sizes = [16, 8], strides = [1, 1]} : vector<36x24xf32> to vector<16x8xf32>
    %59 = vector.extract_strided_slice %39 {offsets = [19, 8], sizes = [16, 8], strides = [1, 1]} : vector<36x24xf32> to vector<16x8xf32>
    %60 = arith.addf %58, %59 : vector<16x8xf32>
    %61 = vector.extract_strided_slice %39 {offsets = [20, 16], sizes = [16, 8], strides = [1, 1]} : vector<36x24xf32> to vector<16x8xf32>
    %62 = arith.addf %60, %61 : vector<16x8xf32>
    %63 = vector.extract_strided_slice %10 {offsets = [19, 24], sizes = [16, 8], strides = [1, 1]} : vector<36x32xf32> to vector<16x8xf32>
    %c0_40 = arith.constant 0 : index
    %c0_41 = arith.constant 0 : index
    %64 = vector.load %arg5[%c0_40, %c0_41] : memref<1x8xf32, #tpu.memory_space<vmem>>, vector<1x8xf32>
    %65 = vector.broadcast %64 : vector<1x8xf32> to vector<16x8xf32>
    %66 = arith.addf %62, %65 : vector<16x8xf32>
    %67 = arith.addf %66, %63 : vector<16x8xf32>
    %c0_42 = arith.constant 0 : index
    %c0_43 = arith.constant 0 : index
    %68 = vector.load %arg6[%c0_42, %c0_43] : memref<1x8xf32, #tpu.memory_space<vmem>>, vector<1x8xf32>
    %69 = vector.broadcast %68 : vector<1x8xf32> to vector<16x8xf32>
    %70 = arith.addf %67, %69 : vector<16x8xf32>
    %cst_44 = arith.constant 0.000000e+00 : f32
    %71 = vector.broadcast %cst_44 : f32 to vector<16x8xf32>
    %72 = arith.maximumf %70, %71 : vector<16x8xf32>
    %c1_45 = arith.constant 1 : index
    %c0_46 = arith.constant 0 : index
    %c0_47 = arith.constant 0 : index
    %73 = vector.load %arg7[%c1_45, %c0_46, %c0_47] : memref<2x16x8xf32, #tpu.memory_space<vmem>>, vector<1x16x8xf32>
    %74 = vector.shape_cast %73 : vector<1x16x8xf32> to vector<16x8xf32>
    %75 = vector.shape_cast %72 : vector<16x8xf32> to vector<1x16x8xf32>
    tpu.vector_store %arg7[%c1_45, %c0_46, %c0_47], %75 {strides = array<i32>} : memref<2x16x8xf32, #tpu.memory_space<vmem>>, vector<1x16x8xf32>,
    return
  }
  func.func @transform_0(%arg0: i32) -> (i32, i32, i32) {
    %c0_i32 = arith.constant 0 : i32
    %c0_i32_0 = arith.constant 0 : i32
    %c0_i32_1 = arith.constant 0 : i32
    return %arg0, %c0_i32, %c0_i32_0 : i32, i32, i32
  }
  func.func @transform_1(%arg0: i32) -> (i32, i32) {
    %c0_i32 = arith.constant 0 : i32
    %c0_i32_0 = arith.constant 0 : i32
    %c0_i32_1 = arith.constant 0 : i32
    return %c0_i32, %c0_i32_0 : i32, i32
  }
  func.func @transform_2(%arg0: i32) -> (i32, i32) {
    %c0_i32 = arith.constant 0 : i32
    %c0_i32_0 = arith.constant 0 : i32
    %c0_i32_1 = arith.constant 0 : i32
    return %c0_i32, %c0_i32_0 : i32, i32
  }
  func.func @transform_3(%arg0: i32) -> (i32, i32) {
    %c0_i32 = arith.constant 0 : i32
    %c0_i32_0 = arith.constant 0 : i32
    %c0_i32_1 = arith.constant 0 : i32
    return %c0_i32, %c0_i32_0 : i32, i32
  }
  func.func @transform_4(%arg0: i32) -> (i32, i32) {
    %c0_i32 = arith.constant 0 : i32
    %c0_i32_0 = arith.constant 0 : i32
    %c0_i32_1 = arith.constant 0 : i32
    return %c0_i32, %c0_i32_0 : i32, i32
  }
  func.func @transform_5(%arg0: i32) -> (i32, i32) {
    %c0_i32 = arith.constant 0 : i32
    %c0_i32_0 = arith.constant 0 : i32
    %c0_i32_1 = arith.constant 0 : i32
    return %c0_i32, %c0_i32_0 : i32, i32
  }
  func.func @transform_6(%arg0: i32) -> (i32, i32, i32) {
    %c0_i32 = arith.constant 0 : i32
    %c0_i32_0 = arith.constant 0 : i32
    %c0_i32_1 = arith.constant 0 : i32
    return %arg0, %c0_i32, %c0_i32_0 : i32, i32, i32
  }
}

</mosaic_0001>

<bundles_post_ra>
// kernel: tpu_custom_call.1
= control target key start
LH: loop header
LB: loop body
LE: loop exit
PB: predicated region body
PF: predicated region fallthrough
CT: control target
= control target key end

     0   :  { %vm137_vm0 = vcmask 1041408   ;;  %vm24_vm1 = vcmask 27648   ;;  %vm33_vm2 = vsmask.f32 256  ;;  %v553_v1 = vmov 0   ;;  %s555_s30 = smov 112   ;;  %s782_s1 = inlined_call_operand.vmem [shape: bf16[4,32], index: 1, kind: input, shape index: {}]   ;;  %s783_s0 = inlined_call_operand.vmem [shape: bf16[2,16,4], index: 0, kind: input, shape index: {}]   ;;  %s784_s2 = inlined_call_operand.vmem [shape: f32[1,8], index: 2, kind: input, shape index: {}]   ;;  %s785_s3 = inlined_call_operand.vmem [shape: bf16[8,24], index: 3, kind: input, shape index: {}]   ;;  %s786_s4 = inlined_call_operand.vmem [shape: f32[1,8], index: 4, kind: input, shape index: {}]   ;;  %s787_s5 = inlined_call_operand.vmem [shape: f32[1,8], index: 5, kind: input, shape index: {}]   ;;  %s788_s6 = inlined_call_operand.vmem [shape: f32[2,16,8], index: 6, kind: output, shape index: {}]  }
   0x1   :  { %v113_v0 = vld [vmem:[%s782_s1] sm:$0x3]  ;;  %25 = vst.msk [vmem:[#allocation2] sm:$0xf] %vm24_vm1, %v553_v1  ;;  %v32_v4 = vld [vmem:[%s783_s0 + $0x4] sm:$0xf] }
   0x2   :  { %v31_v2 = vld [vmem:[%s783_s0] sm:$0xf]  ;;  %v139_v3 = vsel %vm137_vm0, %v113_v0, 0  ;;  %26 = vst.msk [vmem:[#allocation2 + $0x4] sm:$0xf] %vm24_vm1, %v553_v1  ;;  %v45_v7 = vshrl.u32 %v32_v4, 16 }
   0x3   :  { %v37_v5 = vshrl.u32 %v31_v2, 16  ;;  %148 = vmatpush.bf16.msra.mxu0 %v139_v3  ;;  %541 = vmatpush.bf16.msra.mxu2 %v139_v3  ;;  %vm34_vm3 = vsmask.f32 4368  ;;  %v40_v6 = vshll.u32 %v31_v2, 16  ;;  %v48_v8 = vshll.u32 %v32_v4, 16  ;;  %s556_s7 = smov 104  }
   0x4   :  { %vm57_vm4 = vsmask.f32 7938  ;;  %27 = vst.msk [vmem:[#allocation2 + $0x8] sm:$0xf] %vm24_vm1, %v553_v1  ;;  %vm608_vm5 = vmor %vm33_vm2, %vm34_vm3  ;;  %v47_v11 = vrot.slane %v45_v7, 7  ;;  %vm63_vm6 = vcmask 24576  }
   0x5   :  { %v39_v9 = vrot.slane %v37_v5, 7  ;;  %28 = vst.msk [vmem:[#allocation2 + $0xc] sm:$0xf] %vm24_vm1, %v553_v1  ;;  %v510_v12 = vld [vmem:[%s783_s0 + $0x8] sm:$0xf]  ;;  %vm619_vm7 = vmand %vm24_vm1, %vm57_vm4  ;;  %vm96_vm10 = vcmask 27649  }
   0x6   :  { %v511_v16 = vld [vmem:[%s783_s0 + $0xc] sm:$0xf]  ;;  %vm71_vm8 = vsmask.f32 1280  ;;  %v75_v17 = vshrl.u32 %v510_v12, 16  ;;  %v50_v18 = vor.u32 %v48_v8, %v47_v11  ;;  %v52_v19 = vrot.slane %v47_v11, 4  ;;  %vm64_vm11 = vmand %vm63_vm6, %vm33_vm2 }
   0x7   :  { %v42_v13 = vor.u32 %v40_v6, %v39_v9  ;;  %v43_v14 = vrot.slane %v39_v9, 4  ;;  %vm72_vm9 = vsmask.f32 5392  ;;  %v78_v20 = vshll.u32 %v510_v12, 16  ;;  %s554_s0 = smov 120  }
   0x8   :  { %v59_v21 = vld [vmem:[#allocation2] sm:$0xf]  ;;  %v77_v22 = vrot.slane %v75_v17, 6  ;;  %v84_v23 = vshrl.u32 %v511_v16, 16  ;;  %v87_v24 = vshll.u32 %v511_v16, 16  ;;  %vm29_vm14 = vcmask 25600   ;;  %vm73_vm15 = vmor %vm71_vm8, %vm72_vm9 }
   0x9   :  { %v51_v25 = vsel %vm608_vm5, %v43_v14, %v50_v18  ;;  %v60_v26 = vsel %vm619_vm7, %v42_v13, %v59_v21  ;;  %v80_v27 = vrot.slane %v78_v20, 7  ;;  %vm97_vm12 = vsmask.f32 7942  ;;  %30 = vst.msk [vmem:[#allocation2 + $0x10] sm:$0x3] %vm29_vm14, %v553_v1  ;;  %vm104_vm3 = vmand %vm29_vm14, %vm71_vm8 }
   0xa   :  { %61 = vst [vmem:[#allocation2] sm:$0xf] %v60_v26  ;;  %v86_v28 = vrot.slane %v84_v23, 6  ;;  %v89_v29 = vrot.slane %v87_v24, 7  ;;  %vm98_vm13 = vmand %vm96_vm10, %vm97_vm12  ;;  %vm127_vm0 = vcmask 31744   ;;  %vm188_vm6 = vcmask 1045504  }
   0xb   :  { %62 = vst.msk [vmem:[#allocation2 + $0x4] sm:$0xf] %vm24_vm1, %v51_v25  ;;  %v65_v30 = vld [vmem:[#allocation2 + $0x8] sm:$0x1]  ;;  %v81_v31 = vor.u32 %v80_v27, %v77_v22  ;;  %v99_v32 = vld [vmem:[#allocation2 + $0x8] sm:$0xe] }
   0xc   :  { %v66_v33 = vsel %vm64_vm11, %v52_v19, %v65_v30  ;;  %v90_v34 = vor.u32 %v89_v29, %v86_v28  ;;  %vm164_vm7 = vcmask 60416   ;;  %vm169_vm9 = vcmask 58368   ;;  %v547_v12 = vld [vmem:[%s784_s2] ss:$0 sm:$0xff] }
   0xd   :  { %67 = vst [vmem:[#allocation2 + $0x8] sm:$0x1] %v66_v33  ;;  %v82_v35 = vrot.slane %v81_v31, 4  ;;  %v100_v36 = vsel %vm98_vm13, %v81_v31, %v99_v32  ;;  %v334_v16 = vld [vmem:[%s785_s3] sm:$0xf]  ;;  %vm358_vm10 = vcmask 1043456  }
   0xe   :  { %101 = vst [vmem:[#allocation2 + $0x8] sm:$0xe] %v100_v36  ;;  %v92_v38 = vrot.slane %v90_v34, 4  ;;  %v360_v17 = vsel %vm358_vm10, %v334_v16, 0  ;;  %vm318_vm11 = vcmask 60417   ;;  %vm238_vm14 = vcmask 57344  }
   0xf   :  { %v91_v37 = vsel %vm73_vm15, %v82_v35, %v90_v34  ;;  %167 = vst.msk [vmem:[#allocation3 + $0x8] sm:$0xf] %vm164_vm7, %v553_v1  ;;  %542 = vmatpush.bf16.msra.mxu3 %v360_v17  ;;  %369 = vmatpush.bf16.msra.mxu1 %v360_v17  ;;  %vm319_vm13 = vmand %vm318_vm11, %vm97_vm12  ;;  %v548_v35 = vld [vmem:[%s784_s2] ss:$0 sm:$0xff] }
  0x10   :  { %102 = vst.msk [vmem:[#allocation2 + $0xc] sm:$0xf] %vm24_vm1, %v91_v37  ;;  %v105_v40 = vld [vmem:[#allocation2 + $0x10] sm:$0x3]  ;;  %vm174_vm1 = vcmask 1046528   ;;  %vm325_vm12 = vmand %vm169_vm9, %vm71_vm8 }
  0x11   :  { %v106_v41 = vsel %vm104_vm3, %v92_v38, %v105_v40  ;;  %165 = vst.msk [vmem:[#allocation3] sm:$0xf] %vm164_vm7, %v553_v1  ;;  %vm239_vm8 = vmand %vm238_vm14, %vm33_vm2  ;;  %vm502_vm2 = vcmask 64514  }
  0x12   :  { %v537_v39 = vld [vmem:[#allocation2] sm:$0xff]  ;;  %107 = vst [vmem:[#allocation2 + $0x10] sm:$0x3] %v106_v41  ;;  %vm233_vm15 = vmand %vm164_vm7, %vm57_vm4 }
  0x13   :  { %520 = vmatmul.msk.bf16.vlgmr.msra.gmra.mxu0 %vm127_vm0, %v537_v39  ;;  %166 = vst.msk [vmem:[#allocation3 + $0x4] sm:$0xf] %vm164_vm7, %v553_v1 }
  0x14   :  { %168 = vst.msk [vmem:[#allocation3 + $0xc] sm:$0xf] %vm164_vm7, %v553_v1 }
  0x15   :  { %170 = vst.msk [vmem:[#allocation3 + $0x10] sm:$0x3] %vm169_vm9, %v553_v1 }
  0x16   :  { %v320_v30 = vld [vmem:[#allocation3 + $0x8] sm:$0xe] }
  0x17   :  { %v538_v42 = vld [vmem:[#allocation2 + $0x8] sm:$0xff] }
  0x18   :  { %521 = vmatmul.msk.bf16.vlgmr.msra.gmra.mxu2 %vm127_vm0, %v538_v42  ;;  %v234_v16 = vld [vmem:[#allocation3] sm:$0xf] }
  0x19   :  { %v112_v43 = vld [vmem:[#allocation2 + $0x10] sm:$0x3] }
  0x1a   :  { %v123_v44 = vunpack.c.l.b16 %v112_v43 }
  0x1c   :  { %v126_v45 = vpack.c.b16 %v123_v44, %v123_v44 }
  0x28   :  { %522 = vmatmul.msk.bf16.gmra.mxu2 %vm127_vm0, %v126_v45  ;;  %vm348_vm0 = vcmask 64512  }
  0x90   :  { %v641_v46 = vpop.f32.mrf.mxu0 }
  0x91   :  { %v189_v0 = vrot.slane %v641_v46, 2  ;;  %v175_v5 = vrot.slane %v641_v46, 1 }
  0x98   :  { %v643_v47 = vpop.f32.mrf.mxu0 }
  0x99   :  { %v176_v48 = vrot.slane %v643_v47, 1  ;;  %v190_v63 = vrot.slane %v643_v47, 2 }
  0x9b   :  { %v155_v49 = vpop.f32.mrf.mxu2  ;;  %v191_v4 = vsel %vm188_vm6, %v189_v0, %v190_v63  ;;  %v177_v6 = vsel %vm174_vm1, %v175_v5, %v176_v48 }
  0x9c   :  { %v178_v50 = vrot.slane %v155_v49, 1  ;;  %v192_v53 = vrot.slane %v155_v49, 2 }
  0x9e   :  { %v179_v51 = vsel %vm174_vm1, %v176_v48, %v178_v50  ;;  %v193_v3 = vsel %vm188_vm6, %v190_v63, %v192_v53 }
  0x9f   :  { %182 = vrot.lane.b32.xlu0 %v179_v51, %s554_s0 }
  0xa3   :  { %v157_v52 = vpop.f32.mrf.mxu2 }
  0xa4   :  { %v245_v54 = vrot.slane %v157_v52, 1  ;;  %v261_v55 = vrot.slane %v157_v52, 2 }
  0xa6   :  { %v262_v56 = vsel %vm188_vm6, %v192_v53, %v261_v55  ;;  %v650_v57 = vsel %vm174_vm1, %v178_v50, %v245_v54 }
  0xa7   :  { %265 = vrot.lane.b32.xlu2 %v262_v56, %s555_s30  ;;  %249 = vrot.lane.b32.xlu0 %v650_v57, %s554_s0 }
  0xab   :  { %v160_v58 = vpop.f32.mrf.mxu2 }
  0xac   :  { %v655_v59 = vrot.slane %v160_v58, 1  ;;  %v263_v60 = vrot.slane %v160_v58, 2 }
  0xae   :  { %v264_v61 = vsel %vm188_vm6, %v261_v55, %v263_v60  ;;  %v660_v62 = vsel %vm174_vm1, %v245_v54, %v655_v59  ;;  %v326_v55 = vld [vmem:[#allocation3 + $0x10] sm:$0x3] }
  0xaf   :  { %267 = vrot.lane.b32.xlu2 %v264_v61, %s555_s30  ;;  %251 = vrot.lane.b32.xlu1 %v660_v62, %s554_s0 }
  0xb0   :  { %253 = vrot.lane.b32.xlu0 %v655_v59, %s554_s0 }
  0xb3   :  { %v162_v2 = vpop.f32.mrf.mxu2 }
  0xb7   :  { %269 = vrot.lane.b32.xlu2 %v263_v60, %s555_s30  ;;  %196 = vrot.lane.b32.xlu1 %v193_v3, %s555_s30 }
  0xb8   :  { %194 = vrot.lane.b32.xlu0 %v191_v4, %s555_s30 }
  0xbf   :  { %420 = vrot.lane.b32.xlu2 %v177_v6, %s556_s7  ;;  %180 = vrot.lane.b32.xlu1 %v177_v6, %s554_s0  ;;  %v240_v6 = vld [vmem:[#allocation3 + $0x8] sm:$0x1] }
  0xc0   :  { %422 = vrot.lane.b32.xlu0 %v179_v51, %s556_s7 }
 0x101   :  { %v266_v7 = vpop.permute.xlu2 %265 }
 0x109   :  { %v268_v11 = vpop.permute.xlu2 %267 }
 0x111   :  { %v183_v8 = vpop.permute.xlu0 %182  ;;  %v270_v23 = vpop.permute.xlu2 %269 }
 0x112   :  { %v187_v32 = vadd.f32 %v183_v8, %v643_v47 }
 0x119   :  { %v250_v9 = vpop.permute.xlu0 %249 }
 0x11a   :  { %v258_v13 = vadd.f32 %v250_v9, %v155_v49 }
 0x11c   :  { %v274_v14 = vadd.f32 %v266_v7, %v258_v13 }
 0x11e   :  { %v281_v15 = vadd.f32 %v547_v12, %v274_v14 }
 0x120   :  { %v284_v18 = vmax.f32 %v281_v15, 0.0 }
 0x121   :  { %v252_v1 = vpop.permute.xlu1 %251 }
 0x122   :  { %v287_v19 = vpack.c.bf16 %v284_v18, %v284_v18  ;;  %v259_v20 = vadd.f32 %v252_v1, %v157_v52  ;;  %v254_v21 = vpop.permute.xlu0 %253 }
 0x123   :  { %v260_v22 = vadd.f32 %v254_v21, %v160_v58 }
 0x124   :  { %v291_v24 = vshrl.u32 %v287_v19, 16  ;;  %v275_v25 = vadd.f32 %v268_v11, %v259_v20  ;;  %v294_v28 = vshll.u32 %v287_v19, 16 }
 0x125   :  { %v276_v26 = vadd.f32 %v270_v23, %v260_v22 }
 0x126   :  { %v293_v27 = vrot.slane %v291_v24, 7  ;;  %v282_v29 = vadd.f32 %v547_v12, %v275_v25 }
 0x127   :  { %v283_v31 = vadd.f32 %v547_v12, %v276_v26 }
 0x128   :  { %v296_v33 = vor.u32 %v294_v28, %v293_v27  ;;  %v285_v34 = vmax.f32 %v282_v29, 0.0  ;;  %v297_v51 = vrot.slane %v293_v27, 4 }
 0x129   :  { %v286_v36 = vmax.f32 %v283_v31, 0.0  ;;  %v197_v37 = vpop.permute.xlu1 %196 }
 0x12a   :  { %v321_v38 = vsel %vm319_vm13, %v296_v33, %v320_v30  ;;  %v288_v39 = vpack.c.bf16 %v285_v34, %v285_v34  ;;  %v201_v40 = vadd.f32 %v197_v37, %v187_v32  ;;  %v195_v2 = vpop.permute.xlu0 %194 }
 0x12b   :  { %322 = vst [vmem:[#allocation3 + $0x8] sm:$0xe] %v321_v38  ;;  %v289_v41 = vpack.c.bf16 %v286_v36, %v286_v36 }
 0x12c   :  { %v299_v42 = vshrl.u32 %v288_v39, 16  ;;  %v207_v43 = vadd.f32 %v548_v35, %v201_v40  ;;  %v302_v48 = vshll.u32 %v288_v39, 16 }
 0x12d   :  { %v308_v44 = vshrl.u32 %v289_v41, 16  ;;  %v311_v50 = vshll.u32 %v289_v41, 16 }
 0x12e   :  { %v301_v45 = vrot.slane %v299_v42, 7  ;;  %v209_v49 = vmax.f32 %v207_v43, 0.0 }
 0x12f   :  { %v310_v47 = vrot.slane %v308_v44, 7 }
 0x130   :  { %v304_v52 = vor.u32 %v302_v48, %v301_v45  ;;  %v306_v53 = vrot.slane %v301_v45, 4  ;;  %v211_v54 = vpack.c.bf16 %v209_v49, %v209_v49 }
 0x131   :  { %v313_v56 = vor.u32 %v311_v50, %v310_v47  ;;  %v181_v58 = vpop.permute.xlu1 %180  ;;  %v421_v50 = vpop.permute.xlu2 %420 }
 0x132   :  { %v305_v60 = vsel %vm608_vm5, %v297_v51, %v304_v52  ;;  %v221_v61 = vshrl.u32 %v211_v54, 16  ;;  %v186_v63 = vadd.f32 %v181_v58, %v641_v46  ;;  %v224_v13 = vshll.u32 %v211_v54, 16  ;;  %v423_v51 = vpop.permute.xlu0 %422 }
 0x133   :  { %323 = vst.msk [vmem:[#allocation3 + $0xc] sm:$0xf] %vm164_vm7, %v305_v60  ;;  %v314_v0 = vsel %vm608_vm5, %v306_v53, %v313_v56  ;;  %v550_v60 = vld [vmem:[%s787_s5] ss:$0 sm:$0xff] }
 0x134   :  { %v327_v3 = vsel %vm325_vm12, %v314_v0, %v326_v55  ;;  %v223_v4 = vrot.slane %v221_v61, 7  ;;  %v200_v5 = vadd.f32 %v195_v2, %v186_v63  ;;  %v549_v55 = vld [vmem:[%s786_s4] ss:$0 sm:$0xff] }
 0x135   :  { %328 = vst [vmem:[#allocation3 + $0x10] sm:$0x3] %v327_v3 }
 0x136   :  { %v228_v7 = vrot.slane %v223_v4, 4  ;;  %v206_v8 = vadd.f32 %v548_v35, %v200_v5  ;;  %v226_v17 = vor.u32 %v224_v13, %v223_v4 }
 0x138   :  { %v241_v9 = vsel %vm239_vm8, %v228_v7, %v240_v6  ;;  %v208_v11 = vmax.f32 %v206_v8, 0.0 }
 0x139   :  { %242 = vst [vmem:[#allocation3 + $0x8] sm:$0x1] %v241_v9 }
 0x13a   :  { %v210_v12 = vpack.c.bf16 %v208_v11, %v208_v11 }
 0x13c   :  { %v213_v46 = vshrl.u32 %v210_v12, 16  ;;  %v216_v15 = vshll.u32 %v210_v12, 16  ;;  %v333_v22 = vld [vmem:[#allocation3 + $0x10] sm:$0x3] }
 0x13d   :  { %v344_v24 = vunpack.c.l.b16 %v333_v22 }
 0x13e   :  { %v215_v14 = vrot.slane %v213_v46, 7 }
 0x13f   :  { %v347_v25 = vpack.c.b16 %v344_v24, %v344_v24 }
 0x140   :  { %v218_v18 = vor.u32 %v216_v15, %v215_v14  ;;  %v219_v1 = vrot.slane %v215_v14, 4  ;;  %v540_v19 = vld [vmem:[#allocation3 + $0x8] sm:$0xff] }
 0x141   :  { %532 = vmatmul.msk.bf16.vlgmr.msra.gmra.mxu3 %vm348_vm0, %v540_v19  ;;  %v551_v14 = vld [vmem:[%s786_s4] ss:$0 sm:$0xff] }
 0x142   :  { %v227_v20 = vsel %vm608_vm5, %v219_v1, %v226_v17  ;;  %v235_v21 = vsel %vm233_vm15, %v218_v18, %v234_v16  ;;  %v552_v15 = vld [vmem:[%s787_s5] ss:$0 sm:$0xff] }
 0x143   :  { %236 = vst [vmem:[#allocation3] sm:$0xf] %v235_v21 }
 0x144   :  { %237 = vst.msk [vmem:[#allocation3 + $0x4] sm:$0xf] %vm164_vm7, %v227_v20 }
 0x14b   :  { %v539_v23 = vld [vmem:[#allocation3] sm:$0xff] }
 0x14c   :  { %531 = vmatmul.msk.bf16.vlgmr.msra.gmra.mxu1 %vm348_vm0, %v539_v23 }
 0x151   :  { %533 = vmatmul.msk.bf16.gmra.mxu3 %vm348_vm0, %v347_v25 }
 0x1c4   :  { %v717_v26 = vpop.f32.mrf.mxu3 }
 0x1c5   :  { %v391_v10 = vrot.slane %v717_v26, 1  ;;  %v404_v40 = vrot.slane %v717_v26, 2 }
 0x1c9   :  { %v371_v27 = vpop.f32.mrf.mxu1 }
 0x1ca   :  { %v388_v30 = vrot.slane %v371_v27, 1  ;;  %v401_v31 = vrot.slane %v371_v27, 2 }
 0x1cc   :  { %v719_v28 = vpop.f32.mrf.mxu3 }
 0x1cd   :  { %v440_v38 = vrot.slane %v719_v28, 1  ;;  %v456_v39 = vrot.slane %v719_v28, 2 }
 0x1cf   :  { %v441_v42 = vsel %vm174_vm1, %v391_v10, %v440_v38  ;;  %v457_v43 = vsel %vm188_vm6, %v404_v40, %v456_v39 }
 0x1d1   :  { %v373_v29 = vpop.f32.mrf.mxu1 }
 0x1d2   :  { %v389_v32 = vrot.slane %v373_v29, 1  ;;  %v402_v33 = vrot.slane %v373_v29, 2 }
 0x1d4   :  { %v381_v34 = vpop.f32.mrf.mxu3  ;;  %v403_v35 = vsel %vm188_vm6, %v401_v31, %v402_v33  ;;  %v392_v36 = vsel %vm174_vm1, %v389_v32, %v391_v10  ;;  %v390_v37 = vsel %vm174_vm1, %v388_v30, %v389_v32  ;;  %v405_v44 = vsel %vm188_vm6, %v402_v33, %v404_v40 }
 0x1d5   :  { %406 = vrot.lane.b32.xlu0 %v403_v35, %s555_s30  ;;  %395 = vrot.lane.b32.xlu2 %v392_v36, %s554_s0  ;;  %v458_v45 = vrot.slane %v381_v34, 2  ;;  %v442_v48 = vrot.slane %v381_v34, 1 }
 0x1d6   :  { %393 = vrot.lane.b32.xlu1 %v390_v37, %s554_s0 }
 0x1d7   :  { %v459_v49 = vsel %vm188_vm6, %v456_v39, %v458_v45  ;;  %v443_v47 = vsel %vm174_vm1, %v440_v38, %v442_v48 }
 0x1dc   :  { %v383_v41 = vpop.f32.mrf.mxu3 }
 0x1dd   :  { %444 = vrot.lane.b32.xlu0 %v441_v42, %s554_s0  ;;  %460 = vrot.lane.b32.xlu2 %v457_v43, %s555_s30 }
 0x1de   :  { %408 = vrot.lane.b32.xlu1 %v405_v44, %s555_s30 }
 0x1e5   :  { %462 = vrot.lane.b32.xlu0 %v459_v49, %s555_s30  ;;  %448 = vrot.lane.b32.xlu2 %v442_v48, %s554_s0 }
 0x1e6   :  { %464 = vrot.lane.b32.xlu1 %v458_v45, %s555_s30 }
 0x1ed   :  { %483 = vrot.lane.b32.xlu0 %v655_v59, %s556_s7  ;;  %481 = vrot.lane.b32.xlu2 %v660_v62, %s556_s7 }
 0x1ee   :  { %446 = vrot.lane.b32.xlu1 %v443_v47, %s554_s0 }
 0x1f6   :  { %479 = vrot.lane.b32.xlu1 %v650_v57, %s556_s7 }
 0x22f   :  { %v396_v52 = vpop.permute.xlu2 %395 }
 0x230   :  { %v400_v61 = vadd.f32 %v396_v52, %v373_v29 }
 0x237   :  { %v461_v56 = vpop.permute.xlu2 %460 }
 0x23f   :  { %v449_v6 = vpop.permute.xlu2 %448 }
 0x240   :  { %v455_v11 = vadd.f32 %v449_v6, %v381_v34 }
 0x247   :  { %v407_v53 = vpop.permute.xlu0 %406 }
 0x248   :  { %v394_v54 = vpop.permute.xlu1 %393 }
 0x249   :  { %v399_v59 = vadd.f32 %v394_v54, %v371_v27  ;;  %v482_v27 = vpop.permute.xlu2 %481 }
 0x24b   :  { %v412_v58 = vadd.f32 %v407_v53, %v399_v59 }
 0x24d   :  { %v418_v62 = vadd.f32 %v549_v55, %v412_v58 }
 0x24f   :  { %v426_v63 = vadd.f32 %v421_v50, %v418_v62  ;;  %v445_v57 = vpop.permute.xlu0 %444 }
 0x250   :  { %v409_v0 = vpop.permute.xlu1 %408  ;;  %v453_v17 = vadd.f32 %v445_v57, %v717_v26 }
 0x251   :  { %v432_v2 = vadd.f32 %v550_v60, %v426_v63  ;;  %v413_v3 = vadd.f32 %v409_v0, %v400_v61 }
 0x252   :  { %v469_v22 = vadd.f32 %v461_v56, %v453_v17 }
 0x253   :  { %v434_v4 = vmax.f32 %v432_v2, 0.0  ;;  %v419_v5 = vadd.f32 %v549_v55, %v413_v3 }
 0x254   :  { %v476_v29 = vadd.f32 %v551_v14, %v469_v22 }
 0x255   :  { %436 = vst.msk [vmem:[%s788_s6] sm:$0xff] %vm348_vm0, %v434_v4  ;;  %v427_v7 = vadd.f32 %v423_v51, %v419_v5 }
 0x257   :  { %v433_v8 = vadd.f32 %v550_v60, %v427_v7  ;;  %v463_v9 = vpop.permute.xlu0 %462 }
 0x258   :  { %v465_v12 = vpop.permute.xlu1 %464 }
 0x259   :  { %v435_v46 = vmax.f32 %v433_v8, 0.0  ;;  %v471_v13 = vadd.f32 %v465_v12, %v455_v11 }
 0x25b   :  { %437 = vst.msk [vmem:[%s788_s6 + $0x8] sm:$0xff] %vm348_vm0, %v435_v46  ;;  %v478_v16 = vadd.f32 %v551_v14, %v471_v13 }
 0x25f   :  { %v484_v18 = vpop.permute.xlu0 %483 }
 0x260   :  { %v490_v1 = vadd.f32 %v484_v18, %v478_v16  ;;  %v447_v19 = vpop.permute.xlu1 %446 }
 0x261   :  { %v454_v20 = vadd.f32 %v447_v19, %v719_v28 }
 0x262   :  { %v497_v21 = vadd.f32 %v552_v15, %v490_v1 }
 0x263   :  { %v470_v23 = vadd.f32 %v463_v9, %v454_v20 }
 0x264   :  { %v500_v24 = vmax.f32 %v497_v21, 0.0 }
 0x265   :  { %v477_v25 = vadd.f32 %v551_v14, %v470_v23 }
 0x266   :  { %536 = vst.msk [vmem:[%s788_s6 + $0x1e] sm:$0x3] %vm169_vm9, %v500_v24 }
 0x267   :  { %v489_v10 = vadd.f32 %v482_v27, %v477_v25 }
 0x268   :  { %v480_v30 = vpop.permute.xlu1 %479 }
 0x269   :  { %v496_v26 = vadd.f32 %v552_v15, %v489_v10  ;;  %v488_v31 = vadd.f32 %v480_v30, %v476_v29 }
 0x26b   :  { %v499_v32 = vmax.f32 %v496_v26, 0.0  ;;  %v495_v33 = vadd.f32 %v552_v15, %v488_v31 }
 0x26d   :  { %535 = vst.msk [vmem:[%s788_s6 + $0x16] sm:$0xff] %vm348_vm0, %v499_v32  ;;  %v498_v28 = vmax.f32 %v495_v33, 0.0 }
 0x26f   :  { %534 = vst.msk [vmem:[%s788_s6 + $0xe] sm:$0xfc] %vm502_vm2, %v498_v28 }

</bundles_post_ra>
